<compile_context>
chip_gen: v7x
topology: tpu7x:2x2x1
jax: 0.10.0
libtpu: 0.0.40
codegen_flags: <defaults>
</compile_context>

<pallas_src>
import math

import jax
import jax.numpy as jnp
from jax import lax
from jax.experimental import pallas as pl
from jax.experimental.pallas import tpu as pltpu


# ---------------------------------------------------------------------------
# tiling helpers
# ---------------------------------------------------------------------------

def _largest_divisor(n, cap):
    """Largest divisor of n that is <= cap (at least 1)."""
    best = 1
    for d in range(1, n + 1):
        if d > cap:
            break
        if n % d == 0:
            best = d
    return best


def _row_tile(rows, target):
    """Largest divisor of `rows` that is a multiple of 16 and <= target, else full rows."""
    best = None
    for d in range(16, min(rows, target) + 1, 16):
        if rows % d == 0:
            best = d
    return best if best is not None else rows


def _maybe_vmem_limit(est_bytes):
    """Only request a larger scoped-VMEM limit when the estimate exceeds the default."""
    default = 28 * 1024 * 1024
    if est_bytes <= default:
        return None
    return min(int(est_bytes * 1.25), 96 * 1024 * 1024)


# ---------------------------------------------------------------------------
# kernels
# ---------------------------------------------------------------------------

def _input_proj_kernel(x_ref, w_ih_ref, b_ref, gx_ref):
    # (tm, I) @ (I, 4H) -> (tm, 4H), bias folded in.
    gx_ref[...] = (
        jnp.dot(x_ref[...], w_ih_ref[...], preferred_element_type=jnp.float32)
        + b_ref[...]
    )


def _lstm_recurrent_kernel(gx_ref, h0_ref, c0_ref, w_hh_ref,
                           h_all_ref, hn_ref, cn_ref):
    # hn_ref / cn_ref have constant block indices -> VMEM-resident carried state.
    @pl.when(pl.program_id(0) == 0)
    def _():
        hn_ref[...] = h0_ref[...]
        cn_ref[...] = c0_ref[...]

    # per-gate recurrent weight slabs (bf16), hoisted out of the step loop
    w_i = w_hh_ref[0]
    w_f = w_hh_ref[1]
    w_g = w_hh_ref[2]
    w_o = w_hh_ref[3]

    k_steps = gx_ref.shape[0]

    def step(k, carry):
        h, c = carry                          # f32 recurrent state
        hb = h.astype(jnp.bfloat16)           # bf16 MXU input
        gx = gx_ref[k]                        # (4, B, H) f32: x @ W_ih^T + b, gate-major
        i_g = jax.nn.sigmoid(gx[0] + jnp.dot(hb, w_i, preferred_element_type=jnp.float32))
        f_g = jax.nn.sigmoid(gx[1] + jnp.dot(hb, w_f, preferred_element_type=jnp.float32))
        g_g = jnp.tanh(      gx[2] + jnp.dot(hb, w_g, preferred_element_type=jnp.float32))
        o_g = jax.nn.sigmoid(gx[3] + jnp.dot(hb, w_o, preferred_element_type=jnp.float32))
        c_new = f_g * c + i_g * g_g
        h_new = o_g * jnp.tanh(c_new)
        h_all_ref[k] = h_new.astype(h_all_ref.dtype)
        return h_new, c_new

    h_last, c_last = lax.fori_loop(0, k_steps, step,
                                   (hn_ref[...], cn_ref[...]), unroll=True)
    hn_ref[...] = h_last
    cn_ref[...] = c_last


def _vocab_softmax_kernel(h_ref, w_v_ref, b_v_ref, p_ref):
    logits = (jnp.dot(h_ref[...], w_v_ref[...], preferred_element_type=jnp.float32)
              + b_v_ref[...])
    m = jnp.max(logits, axis=-1, keepdims=True)
    e = jnp.exp(logits - m)
    denom = jnp.sum(e, axis=-1, keepdims=True)
    # Exact f32 division: keeps each row's probabilities summing to 1 to f32 precision.
    p_ref[...] = e / denom


# ---------------------------------------------------------------------------
# wrapper
# ---------------------------------------------------------------------------

def rnn_decoder_forward(embedded_words, hidden_states, params):
    """Pallas forward matching RNNDecoder.forward.

    embedded_words: (T, B, I) seq-first (like torch.nn.LSTM default)
    hidden_states:  (h0, c0), each (1, B, H)
    returns: voc_scores (T*B, V) f32 softmax probs, (h_n, c_n) each (1, B, H) f32
    """
    h0, c0 = hidden_states
    T, B, I = embedded_words.shape
    H = params["w_hh_g"].shape[1]
    V = params["w_v_t"].shape[1]

    # keep matmul activations bf16 (do not upcast the input stream to f32)
    x_flat = embedded_words.reshape(T * B, I).astype(jnp.bfloat16)

    # ---- 1) hoisted input projection: one large GEMM over all T*B rows -------
    tm_a = _row_tile(T * B, 512)
    gx_flat = pl.pallas_call(
        _input_proj_kernel,
        out_shape=jax.ShapeDtypeStruct((T * B, 4 * H), jnp.float32),
        grid_spec=pltpu.PrefetchScalarGridSpec(
            num_scalar_prefetch=0,
            grid=(T * B // tm_a,),
            in_specs=[
                pl.BlockSpec((tm_a, I), lambda r: (r, 0)),
                pl.BlockSpec((I, 4 * H), lambda r: (0, 0)),
                pl.BlockSpec((1, 4 * H), lambda r: (0, 0)),
            ],
            out_specs=pl.BlockSpec((tm_a, 4 * H), lambda r: (r, 0)),
        ),
        compiler_params=pltpu.CompilerParams(dimension_semantics=("parallel",)),
    )(x_flat, params["w_ih_t"], params["b"])

    # gate-major layout so the recurrent kernel never slices inside a lane group
    gx = gx_flat.reshape(T, B, 4, H).transpose(0, 2, 1, 3)      # (T, 4, B, H)

    # ---- 2) serial recurrence: K timesteps per grid step ----------------------
    # keep the gx block <= ~2 MiB and bound the unrolled step count
    k_cap = max(1, (2 * 1024 * 1024) // (16 * B * H))
    K = _largest_divisor(T, min(T, k_cap, 64))

    h_all, hn, cn = pl.pallas_call(
        _lstm_recurrent_kernel,
        out_shape=(
            jax.ShapeDtypeStruct((T, B, H), jnp.bfloat16),  # activation stream for proj GEMM
            jax.ShapeDtypeStruct((B, H), jnp.float32),
            jax.ShapeDtypeStruct((B, H), jnp.float32),
        ),
        grid_spec=pltpu.PrefetchScalarGridSpec(
            num_scalar_prefetch=0,
            grid=(T // K,),
            in_specs=[
                pl.BlockSpec((K, 4, B, H), lambda t: (t, 0, 0, 0)),   # gates_x stream
                pl.BlockSpec((B, H), lambda t: (0, 0)),               # h0
                pl.BlockSpec((B, H), lambda t: (0, 0)),               # c0
                pl.BlockSpec((4, H, H), lambda t: (0, 0, 0)),         # per-gate W_hh^T (bf16)
            ],
            out_specs=(
                pl.BlockSpec((K, B, H), lambda t: (t, 0, 0)),         # h_all
                pl.BlockSpec((B, H), lambda t: (0, 0)),               # h_n (carried state)
                pl.BlockSpec((B, H), lambda t: (0, 0)),               # c_n (carried state)
            ),
        ),
        compiler_params=pltpu.CompilerParams(
            dimension_semantics=("arbitrary",)),   # recurrent carry: sequential
    )(gx,
      h0.reshape(B, H).astype(jnp.float32),
      c0.reshape(B, H).astype(jnp.float32),
      params["w_hh_g"])

    # ---- 3) vocab projection + softmax: big parallel GEMM ---------------------
    rows = T * B
    tm_c = _row_tile(rows, 256)
    # TODO(synk): for very large vocab on v7x, tile the V axis (two-pass/online softmax)
    # and single-buffer the weight blocks (pipeline_mode=pl.Buffered(1)) to fit 64 MiB VMEM.
    est_vmem = (2 * tm_c * H * 2 + 2 * tm_c * V * 4      # h block + probs block (double-buffered)
                + 2 * (H * V * 2 + V * 4))               # W_v^T + b_v
    voc_scores = pl.pallas_call(
        _vocab_softmax_kernel,
        out_shape=jax.ShapeDtypeStruct((rows, V), jnp.float32),
        grid_spec=pltpu.PrefetchScalarGridSpec(
            num_scalar_prefetch=0,
            grid=(rows // tm_c,),
            in_specs=[
                pl.BlockSpec((tm_c, H), lambda r: (r, 0)),
                pl.BlockSpec((H, V), lambda r: (0, 0)),
                pl.BlockSpec((1, V), lambda r: (0, 0)),
            ],
            out_specs=pl.BlockSpec((tm_c, V), lambda r: (r, 0)),
        ),
        compiler_params=pltpu.CompilerParams(
            dimension_semantics=("parallel",),
            vmem_limit_bytes=_maybe_vmem_limit(est_vmem)),
    )(h_all.reshape(rows, H), params["w_v_t"], params["b_v"])

    return voc_scores, (hn.reshape(1, B, H), cn.reshape(1, B, H))


# ---------------------------------------------------------------------------
# params / reference
# ---------------------------------------------------------------------------

def _xavier_uniform(key, shape):
    fan_out, fan_in = shape
    bound = math.sqrt(6.0 / (fan_in + fan_out))
    return jax.random.uniform(key, shape, jnp.float32, -bound, bound)


def init_params(key, input_size, hidden_size, voc_size):
    k1, k2, k3, k4 = jax.random.split(key, 4)
    H = hidden_size
    # PyTorch shapes: weight_ih (4H, I), weight_hh (4H, H), gate order [i, f, g, o];
    # xavier_uniform init, zero LSTM biases.
    w_ih = _xavier_uniform(k1, (4 * H, input_size))
    w_hh = _xavier_uniform(k2, (4 * H, H))
    # reduce_h_v: Linear(hidden, voc) -- deterministic synthetic init (xavier + small bias).
    w_v = _xavier_uniform(k3, (voc_size, H))
    b_v = jax.random.uniform(k4, (voc_size,), jnp.float32, -0.01, 0.01)
    return {
        "w_ih_t": w_ih.T.astype(jnp.bfloat16),                                    # (I, 4H)
        "w_hh_g": w_hh.reshape(4, H, H).transpose(0, 2, 1).astype(jnp.bfloat16),  # (4, H_in, H_out)
        "b": jnp.zeros((1, 4 * H), jnp.float32),                                  # b_ih + b_hh = 0
        "w_v_t": w_v.T.astype(jnp.bfloat16),                                      # (H, V)
        "b_v": b_v.reshape(1, voc_size),
    }


def _round_bf16(x):
    return x.astype(jnp.bfloat16).astype(jnp.float32)


def _reference_forward(x, h0, c0, params):
    """Pure-JAX f32 reference (lax.scan LSTM).

    Mirrors the kernel's bf16 rounding of matmul operands (weights are already
    bf16-rounded in `params`) so the comparison isolates kernel bugs rather than
    bf16 quantization error.
    """
    H = params["w_hh_g"].shape[1]
    w_ih = params["w_ih_t"].astype(jnp.float32)                                   # (I, 4H)
    w_hh = jnp.concatenate([params["w_hh_g"][g].astype(jnp.float32)
                            for g in range(4)], axis=1)                           # (H, 4H)
    b = params["b"]
    w_v = params["w_v_t"].astype(jnp.float32)
    b_v = params["b_v"]

    x = _round_bf16(x)   # kernel feeds bf16 activations to the input-projection GEMM

    def step(carry, x_t):
        h, c = carry
        hb = _round_bf16(h)                     # kernel casts h to bf16 for the MXU
        gates = x_t @ w_ih + hb @ w_hh + b
        i = jax.nn.sigmoid(gates[:, 0 * H:1 * H])
        f = jax.nn.sigmoid(gates[:, 1 * H:2 * H])
        g = jnp.tanh(gates[:, 2 * H:3 * H])
        o = jax.nn.sigmoid(gates[:, 3 * H:4 * H])
        c_new = f * c + i * g
        h_new = o * jnp.tanh(c_new)
        return (h_new, c_new), h_new

    (hn, cn), outs = jax.lax.scan(step, (h0[0], c0[0]), x)
    outs_b = _round_bf16(outs)                  # kernel stores h_all as bf16 for the vocab GEMM
    logits = outs_b.reshape(-1, H) @ w_v + b_v
    probs = jax.nn.softmax(logits, axis=1)
    return probs, (hn[None], cn[None])


if __name__ == "__main__":
    T, B = 8, 8
    INPUT_SIZE, HIDDEN_SIZE, VOC_SIZE = 16, 32, 128

    key = jax.random.PRNGKey(0)
    kp, kx, kh, kc = jax.random.split(key, 4)

    params = init_params(kp, INPUT_SIZE, HIDDEN_SIZE, VOC_SIZE)
    embedded_words = jax.random.normal(kx, (T, B, INPUT_SIZE), jnp.float32)
    h0 = jax.random.normal(kh, (1, B, HIDDEN_SIZE), jnp.float32)
    c0 = jax.random.normal(kc, (1, B, HIDDEN_SIZE), jnp.float32)

    voc_scores, (hn, cn) = rnn_decoder_forward(embedded_words, (h0, c0), params)
    jax.block_until_ready((voc_scores, hn, cn))

    ref_scores, (ref_hn, ref_cn) = _reference_forward(embedded_words, h0, c0, params)

    assert voc_scores.shape == (T * B, VOC_SIZE)
    assert hn.shape == (1, B, HIDDEN_SIZE) and cn.shape == (1, B, HIDDEN_SIZE)
    # softmax rows must sum to 1 (exact f32 division inside the kernel)
    assert jnp.allclose(jnp.sum(voc_scores, axis=1), 1.0, atol=1e-3)
    # reference mirrors the kernel's bf16 rounding, so residual error is only
    # accumulation-order / MXU-vs-VPU differences.
    assert jnp.allclose(voc_scores, ref_scores, atol=2e-3, rtol=2e-2)
    assert jnp.allclose(hn, ref_hn, atol=5e-3, rtol=5e-2)
    assert jnp.allclose(cn, ref_cn, atol=5e-3, rtol=5e-2)

    print("KERNEL_OK")
</pallas_src>

<mosaic_0001>
module attributes {stable_mosaic.version = 11 : i64} {
  func.func @_input_proj_kernel(%arg0: i32, %arg1: memref<64x16xbf16, #tpu.memory_space<vmem>>, %arg2: memref<16x128xbf16, #tpu.memory_space<vmem>>, %arg3: memref<1x128xf32, #tpu.memory_space<vmem>>, %arg4: memref<64x128xf32, #tpu.memory_space<vmem>>) attributes {dimension_semantics = [#tpu.dimension_semantics<parallel>], iteration_bounds = array<i64: 1>, scalar_prefetch = 0 : i64, scratch_operands = 0 : i64, tpu.core_type = #tpu.core_type<tc>, window_params = [{transform_indices = @transform_0, window_bounds = array<i64: 64, 16>}, {pipeline_mode = #tpu.pipeline_mode<synchronous>, transform_indices = @transform_1, window_bounds = array<i64: 16, 128>}, {pipeline_mode = #tpu.pipeline_mode<synchronous>, transform_indices = @transform_2, window_bounds = array<i64: 1, 128>}, {transform_indices = @transform_3, window_bounds = array<i64: 64, 128>}]} {
    %c0 = arith.constant 0 : index
    %c0_0 = arith.constant 0 : index
    %0 = vector.load %arg1[%c0, %c0_0] : memref<64x16xbf16, #tpu.memory_space<vmem>>, vector<64x16xbf16>
    %c0_1 = arith.constant 0 : index
    %c0_2 = arith.constant 0 : index
    %1 = vector.load %arg2[%c0_1, %c0_2] : memref<16x128xbf16, #tpu.memory_space<vmem>>, vector<16x128xbf16>
    %cst = arith.constant dense<0.000000e+00> : vector<64x128xf32>
    %2 = tpu.matmul %0, %1, %cst {dimension_numbers = #tpu.dot_dimension_numbers<[1], [0], [0], [1], [0, 0, 1, 1], [], []>} : vector<64x16xbf16>, vector<16x128xbf16>, vector<64x128xf32> -> vector<64x128xf32>
    %c0_3 = arith.constant 0 : index
    %c0_4 = arith.constant 0 : index
    %3 = vector.load %arg3[%c0_3, %c0_4] : memref<1x128xf32, #tpu.memory_space<vmem>>, vector<1x128xf32>
    %4 = vector.broadcast %3 : vector<1x128xf32> to vector<64x128xf32>
    %5 = arith.addf %2, %4 : vector<64x128xf32>
    %c0_5 = arith.constant 0 : index
    %c0_6 = arith.constant 0 : index
    %6 = vector.load %arg4[%c0_5, %c0_6] : memref<64x128xf32, #tpu.memory_space<vmem>>, vector<64x128xf32>
    tpu.vector_store %arg4[%c0_5, %c0_6], %5 {strides = array<i32>} : memref<64x128xf32, #tpu.memory_space<vmem>>, vector<64x128xf32>,
    return
  }
  func.func @transform_0(%arg0: i32) -> (i32, i32) {
    %c0_i32 = arith.constant 0 : i32
    %c0_i32_0 = arith.constant 0 : i32
    return %arg0, %c0_i32 : i32, i32
  }
  func.func @transform_1(%arg0: i32) -> (i32, i32) {
    %c0_i32 = arith.constant 0 : i32
    %c0_i32_0 = arith.constant 0 : i32
    %c0_i32_1 = arith.constant 0 : i32
    return %c0_i32, %c0_i32_0 : i32, i32
  }
  func.func @transform_2(%arg0: i32) -> (i32, i32) {
    %c0_i32 = arith.constant 0 : i32
    %c0_i32_0 = arith.constant 0 : i32
    %c0_i32_1 = arith.constant 0 : i32
    return %c0_i32, %c0_i32_0 : i32, i32
  }
  func.func @transform_3(%arg0: i32) -> (i32, i32) {
    %c0_i32 = arith.constant 0 : i32
    %c0_i32_0 = arith.constant 0 : i32
    return %arg0, %c0_i32 : i32, i32
  }
}

</mosaic_0001>

<bundles_post_ra>
// kernel: tpu_custom_call.1
= control target key start
LH: loop header
LB: loop body
LE: loop exit
PB: predicated region body
PF: predicated region fallthrough
CT: control target
= control target key end

     0   :  { %vm59_vm0 = vcmask 130048   ;;  %s273_s0 = inlined_call_operand.vmem [shape: bf16[64,16], index: 0, kind: input, shape index: {}]   ;;  %s274_s1 = inlined_call_operand.vmem [shape: bf16[16,128], index: 1, kind: input, shape index: {}]   ;;  %s275_s2 = inlined_call_operand.vmem [shape: f32[1,128], index: 2, kind: input, shape index: {}]   ;;  %s276_s3 = inlined_call_operand.hbm [shape: f32[64,128], index: 3, kind: output, shape index: {}]  }
   0x1   :  { %v191_v0 = vld [vmem:[%s274_s1] sm:$0xff]   ;;  %v193_v2 = vld [vmem:[%s273_s0 + $0x10] sm:$0xff]   ;;  %v194_v3 = vld [vmem:[%s273_s0 + $0x8] sm:$0xff]  }
   0x2   :  { %v192_v1 = vld [vmem:[%s273_s0] sm:$0xff]   ;;  %176 = vmatprep.subr.bf16.mxu0 %v191_v0  ;;  %186 = vmatprep.subr.bf16.mxu1 %v191_v0  ;;  %v195_v4 = vld [vmem:[%s273_s0 + $0x18] sm:$0xff]  }
   0x3   :  { %177 = vmatpush3.bf16.msra.mxu0 %v191_v0  ;;  %187 = vmatpush3.bf16.msra.mxu1 %v191_v0 }
   0x4   :  { %178 = vmatprep.mubr.msk.bf16.mxu0 %vm59_vm0, %v192_v1  ;;  %182 = vmatprep.mubr.msk.bf16.mxu1 %vm59_vm0, %v193_v2 }
   0x5   :  { %8 = vsyncpa [#allocation3], 0  ;;  %v161_v5 = vld [vmem:[%s275_s2] ss:$0 sm:$0xff]  ;;  %s220_s23 = smov [#allocation2]  }
   0x6   :  { %179 = vmatmul.mubr.msk.bf16.vlgmr.msra.gmra.mrb[0].mxu0 %vm59_vm0, %v194_v3  ;;  %183 = vmatmul.mubr.msk.bf16.vlgmr.msra.gmra.mrb[0].mxu1 %vm59_vm0, %v195_v4  ;;  %s150_s24 = sshll.u32 %s220_s23, 4  ;;  %s151_s24 = int_to_ptr.vmem [resolvable:$true] %s150_s24 }
   0x7   :  { %s196_s0 = scalar_lea.vmem %s151_s24, 1024  ;;  %p201_p1 = scmp.lt.s32.totalorder %s151_s24, %s151_s24 }
   0x8   :  { %p197_p0 = scmp.ne.s32.totalorder %s151_s24, %s196_s0  ;;  %p202_p2 = scmp.lt.s32.totalorder %s196_s0, %s196_s0 }
   0xa   :  { %p203_p3 = por %p202_p2, %p201_p1 }
   0xc   :  { %p204_p4 = pnand %p203_p3, %p197_p0 }
  0xd9   :  { %v180_v6 = vpop.f32.mrb[0].mxu0  ;;  %v184_v7 = vpop.f32.mrb[0].mxu1 }
  0xda   :  { %v115_v8 = vadd.f32 %v180_v6, %v161_v5  ;;  %v131_v9 = vadd.f32 %v184_v7, %v161_v5  ;;  %v106_v10 = vpop.f32.mrb[1].mxu0  ;;  %v122_v11 = vpop.f32.mrb[1].mxu1 }
  0xdb   :  { %v107_v12 = vadd.f32 %v161_v5, %v106_v10  ;;  %v123_v13 = vadd.f32 %v161_v5, %v122_v11  ;;  %v181_v14 = vpop.f32.mrb[2].mxu0  ;;  %v185_v15 = vpop.f32.mrb[2].mxu1 }
  0xdc   :  { %139 = vst [vmem:[#allocation2 + $0x10] sm:$0xff] %v115_v8  ;;  %143 = vst [vmem:[#allocation2 + $0x30] sm:$0xff] %v131_v9  ;;  %v118_v16 = vadd.f32 %v181_v14, %v161_v5  ;;  %v134_v17 = vadd.f32 %v185_v15, %v161_v5  ;;  %v109_v18 = vpop.f32.mrb[3].mxu0  ;;  %v125_v19 = vpop.f32.mrb[3].mxu1 }
  0xdd   :  { %137 = vst [vmem:[#allocation2] sm:$0xff] %v107_v12  ;;  %141 = vst [vmem:[#allocation2 + $0x20] sm:$0xff] %v123_v13  ;;  %v110_v20 = vadd.f32 %v161_v5, %v109_v18  ;;  %v126_v21 = vadd.f32 %v161_v5, %v125_v19 }
  0xde   :  { %140 = vst [vmem:[#allocation2 + $0x18] sm:$0xff] %v118_v16  ;;  %144 = vst [vmem:[#allocation2 + $0x38] sm:$0xff] %v134_v17 }
  0xdf   :  { %138 = vst [vmem:[#allocation2 + $0x8] sm:$0xff] %v110_v20  ;;  %142 = vst [vmem:[#allocation2 + $0x28] sm:$0xff] %v126_v21 }
  0xe0   :  { %207 = shalt.err (!%p204_p4)
}
  0xe1   :  { %s208_s26 = scalar_lea.hbm %s276_s3, 1024 }
  0xe2   :  { %p209_p5 = scmp.ne.s32.totalorder %s276_s3, %s208_s26  ;;  %p212_p6 = scmp.lt.u32.totalorder %s208_s26, %s276_s3 }
  0xe4   :  { %p214_p7 = pnand %p212_p6, %p209_p5 }
  0xe6   :  { %217 = shalt.err (!%p214_p7)
}
  0xe7   :  { %s221_s4 = smov 128   ;;  %s222_s5 = smov 8  }
  0xe8   :  { %156 = dma.vmem_to_hbm [thread:$0]  %s151_s24, 1024, %s276_s3, [#allocation3], %s221_s4, %s221_s4, %s222_s5  }
  0xe9   :  { %218 = dma.done.wait [#allocation3], 1024  }
  0xea   :  { %219 = vsyncadd [#allocation3], 4294966272 }
  0xeb   :  { %160 = vsyncpa [#allocation3], 1 }

</bundles_post_ra>
